<compile_context>
chip_gen: v6e
topology: v6e:2x2x1
jax: 0.10.0
libtpu: 0.0.40
codegen_flags: <defaults>
</compile_context>

<pallas_src>
import functools
import math

import jax
import jax.numpy as jnp
from jax.experimental import pallas as pl
from jax.experimental.pallas import tpu as pltpu

_MIB = 1024 * 1024


def _round_up(x, m):
    return ((x + m - 1) // m) * m


def _tpu_generation_params():
    """Return (vmem_capacity_bytes_per_core, num_tensorcores_per_chip), defensively."""
    vmem = None
    try:
        info = pltpu.get_tpu_info()
        vmem = int(getattr(info, "vmem_capacity_bytes", 0)) or None
    except Exception:
        vmem = None
    if vmem is None:
        vmem = 64 * _MIB  # conservative fallback: smallest per-TC VMEM (v7x)
    # v7x is the only generation with 2 TensorCores per chip, and the only one with
    # 64 MiB VMEM per TC (v5e / v6e: 128 MiB, 1 TC).
    num_tc = 2 if vmem < 128 * _MIB else 1
    return vmem, num_tc


def _self_attention_kernel(q_ref, k_ref, v_ref, o_ref, *, scale, scale_into_q):
    # Block shapes: q (Bb, Tq, D), k (Bb, Tk, D), v (Bb, Tk, DV), o (Bb, Tq, DV)
    q = q_ref[...]
    k = k_ref[...]
    v = v_ref[...]

    if scale_into_q:
        # Fold 1/sqrt(d) into the smaller operand (f32 inputs only).
        q = q * jnp.asarray(scale, q.dtype)

    # QK^T without transposing K: contract the feature axis of both operands (MXU).
    scores = jnp.einsum("bqd,bkd->bqk", q, k, preferred_element_type=jnp.float32)
    if not scale_into_q:
        scores = scores * scale                      # (Bb, Tq, Tk) f32

    # Row softmax statistics over the key axis (max-subtracted, f32).
    m = jnp.max(scores, axis=-1, keepdims=True)
    e = jnp.exp(scores - m)
    denom = jnp.sum(e, axis=-1, keepdims=True)

    # (e @ V) first, normalize afterwards: the reciprocal multiply touches (Tq, DV)
    # instead of (Tq, Tk).  EUP vrcp (approx) -> essentially free VLIW slot.
    pv = jnp.einsum("bqk,bkv->bqv", e.astype(v.dtype), v,
                    preferred_element_type=jnp.float32)
    o_ref[...] = (pv * pl.reciprocal(denom, approx=True)).astype(o_ref.dtype)


def self_attention(queries, keys, values):
    """Pallas SelfAttention forward.

    queries: (B, Tq, d), keys: (B, Tk, d), values: (B, Tk, dv) -> (B, Tq, dv).
    """
    B, Tq, d = queries.shape
    Bk, Tk, dk = keys.shape
    Bv, Tkv, dv = values.shape
    assert (Bk, dk) == (B, d) and (Bv, Tkv) == (B, Tk)

    scale = 1.0 / math.sqrt(d)

    # --- generation-aware VMEM numbers ---------------------------------------
    vmem_cap, num_tc = _tpu_generation_params()
    if vmem_cap >= 128 * _MIB:           # v5e / v6e: VMEM is essentially free
        vmem_limit = 96 * _MIB
        vmem_budget = 64 * _MIB
    else:                                # v7x: 64 MiB per TC -> leave headroom
        vmem_limit = 32 * _MIB
        vmem_budget = 24 * _MIB

    # --- per-batch VMEM footprint at (8,128) vreg/tile granularity -----------
    # double-buffered native-dtype in/out tiles + f32 scores / exp / pv / stats.
    itemsize = jnp.dtype(queries.dtype).itemsize
    tq8, tk8 = _round_up(Tq, 8), _round_up(Tk, 8)
    d128, dv128, tk128 = _round_up(d, 128), _round_up(dv, 128), _round_up(Tk, 128)
    per_b = (2 * itemsize * (tq8 * d128 + tk8 * d128 + tk8 * dv128 + tq8 * dv128)
             + 4 * (2 * tq8 * tk128 + tq8 * dv128 + 2 * tq8 * 128))

    # --- batch block: biggest that fits; >= 2 steps only on 2-TC chips (v7x) ---
    bb = max(1, min(B, vmem_budget // max(per_b, 1)))
    if num_tc >= 2 and B >= 2:
        bb = min(bb, (B + 1) // 2)
    grid_b = pl.cdiv(B, bb)              # edge block OK: batches are independent

    # Fold the scale into Q only for f32 inputs (keeps full mantissa for bf16).
    scale_into_q = (Tk > d) and (queries.dtype == jnp.float32)

    kernel = functools.partial(_self_attention_kernel,
                               scale=scale, scale_into_q=scale_into_q)

    return pl.pallas_call(
        kernel,
        out_shape=jax.ShapeDtypeStruct((B, Tq, dv), queries.dtype),
        grid_spec=pltpu.PrefetchScalarGridSpec(
            num_scalar_prefetch=0,
            grid=(grid_b,),
            in_specs=[
                pl.BlockSpec((bb, Tq, d), lambda b: (b, 0, 0)),
                pl.BlockSpec((bb, Tk, d), lambda b: (b, 0, 0)),
                pl.BlockSpec((bb, Tk, dv), lambda b: (b, 0, 0)),
            ],
            out_specs=pl.BlockSpec((bb, Tq, dv), lambda b: (b, 0, 0)),
        ),
        compiler_params=pltpu.CompilerParams(
            dimension_semantics=("parallel",),
            vmem_limit_bytes=vmem_limit,
        ),
    )(queries, keys, values)


def _reference(queries, keys, values):
    d = queries.shape[-1]
    scores = jnp.einsum("bqd,bkd->bqk", queries, keys) / math.sqrt(d)
    w = jax.nn.softmax(scores, axis=2)
    return jnp.einsum("bqk,bkv->bqv", w, values)


if __name__ == "__main__":
    key = jax.random.PRNGKey(0)
    k_q, k_k, k_v = jax.random.split(key, 3)

    # Small shapes consistent with the module's attention usage.
    B, Tq, Tk, d, dv = 4, 8, 8, 32, 32
    queries = jax.random.normal(k_q, (B, Tq, d), dtype=jnp.float32)
    keys = jax.random.normal(k_k, (B, Tk, d), dtype=jnp.float32)
    values = jax.random.normal(k_v, (B, Tk, dv), dtype=jnp.float32)

    out = self_attention(queries, keys, values)
    jax.block_until_ready(out)

    ref = _reference(queries, keys, values)
    assert out.shape == (B, Tq, dv)
    # pl.reciprocal(approx=True) has ~2^-12 relative error in the attention weights;
    # the tolerance reflects that.
    assert jnp.allclose(out, ref, atol=2e-3, rtol=2e-3), "mismatch vs reference"

    print("KERNEL_OK")
</pallas_src>

<mosaic_0001>
module attributes {stable_mosaic.version = 11 : i64} {
  func.func @_self_attention_kernel(%arg0: i32, %arg1: memref<2x8x32xf32, #tpu.memory_space<vmem>>, %arg2: memref<2x8x32xf32, #tpu.memory_space<vmem>>, %arg3: memref<2x8x32xf32, #tpu.memory_space<vmem>>, %arg4: memref<2x8x32xf32, #tpu.memory_space<vmem>>) attributes {dimension_semantics = [#tpu.dimension_semantics<parallel>], iteration_bounds = array<i64: 2>, scalar_prefetch = 0 : i64, scratch_operands = 0 : i64, tpu.core_type = #tpu.core_type<tc>, window_params = [{transform_indices = @transform_0, window_bounds = array<i64: 2, 8, 32>}, {transform_indices = @transform_1, window_bounds = array<i64: 2, 8, 32>}, {transform_indices = @transform_2, window_bounds = array<i64: 2, 8, 32>}, {transform_indices = @transform_3, window_bounds = array<i64: 2, 8, 32>}]} {
    %c0 = arith.constant 0 : index
    %c0_0 = arith.constant 0 : index
    %c0_1 = arith.constant 0 : index
    %0 = vector.load %arg1[%c0, %c0_0, %c0_1] : memref<2x8x32xf32, #tpu.memory_space<vmem>>, vector<2x8x32xf32>
    %c0_2 = arith.constant 0 : index
    %c0_3 = arith.constant 0 : index
    %c0_4 = arith.constant 0 : index
    %1 = vector.load %arg2[%c0_2, %c0_3, %c0_4] : memref<2x8x32xf32, #tpu.memory_space<vmem>>, vector<2x8x32xf32>
    %c0_5 = arith.constant 0 : index
    %c0_6 = arith.constant 0 : index
    %c0_7 = arith.constant 0 : index
    %2 = vector.load %arg3[%c0_5, %c0_6, %c0_7] : memref<2x8x32xf32, #tpu.memory_space<vmem>>, vector<2x8x32xf32>
    "tpu.trace_start"() <{level = 10 : i32, message = "bqd,bkd->bqk"}> : () -> ()
    %cst = arith.constant dense<0.000000e+00> : vector<2x8x8xf32>
    %3 = tpu.matmul %0, %1, %cst {dimension_numbers = #tpu.dot_dimension_numbers<[2], [2], [1], [1], [0, 0, 0, 1, 1, 1], [0], [0]>} : vector<2x8x32xf32>, vector<2x8x32xf32>, vector<2x8x8xf32> -> vector<2x8x8xf32>
    "tpu.trace_stop"() : () -> ()
    %cst_8 = arith.constant 0.176776692 : f32
    %4 = vector.broadcast %cst_8 : f32 to vector<2x8x8xf32>
    %5 = arith.mulf %3, %4 : vector<2x8x8xf32>
    %cst_9 = arith.constant dense<0xFF800000> : vector<2x8xf32>
    %6 = vector.multi_reduction <maximumf>, %5, %cst_9 [2] : vector<2x8x8xf32> to vector<2x8xf32>
    %7 = vector.shape_cast %6 : vector<2x8xf32> to vector<2x8x1xf32>
    %8 = vector.broadcast %7 : vector<2x8x1xf32> to vector<2x8x8xf32>
    %9 = arith.subf %5, %8 : vector<2x8x8xf32>
    %10 = math.exp %9 : vector<2x8x8xf32>
    %cst_10 = arith.constant dense<0.000000e+00> : vector<2x8xf32>
    %11 = vector.multi_reduction <add>, %10, %cst_10 [2] : vector<2x8x8xf32> to vector<2x8xf32>
    %12 = vector.shape_cast %11 : vector<2x8xf32> to vector<2x8x1xf32>
    "tpu.trace_start"() <{level = 10 : i32, message = "bqk,bkv->bqv"}> : () -> ()
    %cst_11 = arith.constant dense<0.000000e+00> : vector<2x8x32xf32>
    %13 = tpu.matmul %10, %2, %cst_11 {dimension_numbers = #tpu.dot_dimension_numbers<[2], [1], [1], [2], [0, 0, 0, 1, 1, 2], [0], [0]>} : vector<2x8x8xf32>, vector<2x8x32xf32>, vector<2x8x32xf32> -> vector<2x8x32xf32>
    "tpu.trace_stop"() : () -> ()
    %14 = tpu.reciprocal %12 {approx = true} : vector<2x8x1xf32> -> vector<2x8x1xf32>
    %15 = vector.broadcast %14 : vector<2x8x1xf32> to vector<2x8x32xf32>
    %16 = arith.mulf %13, %15 : vector<2x8x32xf32>
    %c0_12 = arith.constant 0 : index
    %c0_13 = arith.constant 0 : index
    %c0_14 = arith.constant 0 : index
    %17 = vector.load %arg4[%c0_12, %c0_13, %c0_14] : memref<2x8x32xf32, #tpu.memory_space<vmem>>, vector<2x8x32xf32>
    tpu.vector_store %arg4[%c0_12, %c0_13, %c0_14], %16 {strides = array<i32>} : memref<2x8x32xf32, #tpu.memory_space<vmem>>, vector<2x8x32xf32>,
    return
  }
  func.func @transform_0(%arg0: i32) -> (i32, i32, i32) {
    %c0_i32 = arith.constant 0 : i32
    %c0_i32_0 = arith.constant 0 : i32
    %c0_i32_1 = arith.constant 0 : i32
    return %arg0, %c0_i32, %c0_i32_0 : i32, i32, i32
  }
  func.func @transform_1(%arg0: i32) -> (i32, i32, i32) {
    %c0_i32 = arith.constant 0 : i32
    %c0_i32_0 = arith.constant 0 : i32
    %c0_i32_1 = arith.constant 0 : i32
    return %arg0, %c0_i32, %c0_i32_0 : i32, i32, i32
  }
  func.func @transform_2(%arg0: i32) -> (i32, i32, i32) {
    %c0_i32 = arith.constant 0 : i32
    %c0_i32_0 = arith.constant 0 : i32
    %c0_i32_1 = arith.constant 0 : i32
    return %arg0, %c0_i32, %c0_i32_0 : i32, i32, i32
  }
  func.func @transform_3(%arg0: i32) -> (i32, i32, i32) {
    %c0_i32 = arith.constant 0 : i32
    %c0_i32_0 = arith.constant 0 : i32
    %c0_i32_1 = arith.constant 0 : i32
    return %arg0, %c0_i32, %c0_i32_0 : i32, i32, i32
  }
}

</mosaic_0001>

<bundles_post_ra>
// kernel: tpu_custom_call.1
= control target key start
LH: loop header
LB: loop body
LE: loop exit
PB: predicated region body
PF: predicated region fallthrough
CT: control target
= control target key end

     0   :  { %s1306_s0 = inlined_call_operand.hbm [shape: f32[4,8,32], index: 0, kind: input, shape index: {}]   ;;  %s1307_s1 = inlined_call_operand.hbm [shape: f32[4,8,32], index: 1, kind: input, shape index: {}]   ;;  %s1308_s2 = inlined_call_operand.hbm [shape: f32[4,8,32], index: 2, kind: input, shape index: {}]   ;;  %s1309_s3 = inlined_call_operand.hbm [shape: f32[4,8,32], index: 3, kind: output, shape index: {}]  }
   0x1   :  { %1316 = sst [smem:[#allocation12_spill]] %s1306_s0 }
   0x2   :  { %1317 = sst [smem:[#allocation13_spill]] %s1307_s1 }
   0x3   :  { %8 = vsyncpa [#allocation3], 0 }
   0x4   :  { %10 = vsyncpa [#allocation3 + $0x1], 0 }
   0x5   :  { %11 = vsyncpa [#allocation6], 0 }
   0x6   :  { %13 = vsyncpa [#allocation6 + $0x1], 0 }
   0x7   :  { %14 = vsyncpa [#allocation4], 0 }
   0x8   :  { %16 = vsyncpa [#allocation4 + $0x1], 0  ;;  %s1046_s12 = smov 0   ;;  %s1048_s13 = smov 0  }
   0x9   :  { %s1050_s14 = smov 0   ;;  %s1052_s15 = smov 0  }
   0xa LB: > { %s1067_s16 = sadd.s32 4294967295, %s1014_s15   ;;  %s732_s17 = sadd.s32 4294967294, %s1014_s15   ;;  %s1014_s15 = sphi %s1052_s15, %s1337_s15   ;;  %s1010_s14 = sphi %s1050_s14, %s1336_s14   ;;  %s1006_s13 = sphi %s1048_s13, %s1335_s13   ;;  %s1002_s12 = sphi %s1046_s12, %s1334_s12  }
   0xb   : > { %s1071_s18 = sadd.s32 1, %s1014_s15   ;;  %s29_s19 = sadd.s32 1, %s1010_s14 }
   0xc   : > { %s26_s20 = ssub.s32 %s1014_s15, %s1071_s18  ;;  %p36_p0 = scmp.ne.s32.totalorder %s1010_s14, %s1006_s13 }
   0xd   : > { %p27_p1 = scmp.eq.s32.totalorder %s26_s20, 0  ;;  %p37_p2 = scmp.eq.s32.totalorder %s1014_s15, 0 }
   0xe   : > { %p42_p3 = scmp.ne.s32.totalorder %s1006_s13, %s1002_s12  ;;  %p43_p4 = scmp.eq.s32.totalorder %s1067_s16, 0 }
   0xf   : > { %s1083_s21 = scalar_select %p27_p1, %s1010_s14, %s29_s19  }
  0x10   : > { %p38_p5 = por %p37_p2, %p36_p0  ;;  %p1085_p6 = por %p43_p4, %p42_p3 }
  0x11   : > { %p118_p7 = scmp.eq.s32.totalorder %s1067_s16, 1  ;;  %p124_p8 = scmp.eq.s32.totalorder %s732_s17, 1 }
  0x12   : > { %s1318_s22 = scalar_select %p1085_p6, 1, 0 }
  0x13   : > { %p814_p10 = scmp.lt.s32.totalorder %s1014_s15, 2  ;;  %p1092_p11 = por %p118_p7, %p36_p0 }
  0x14   : > { %p1096_p12 = por %p124_p8, %p42_p3  ;;  %s144_s25 = sand.u32 1, %s1010_s14  }
  0x15   : > { %s1319_s23 = scalar_select %p1092_p11, 1, 0 }
  0x16   : > { %s1320_s24 = scalar_select %p1096_p12, 1, 0 }
  0x17   : > { %s1102_s26 = sshll.u32 %s1014_s15, 8  ;;  %s1106_s27 = sshll.u32 %s144_s25, 4 }
  0x18   : > { %p1108_p13 = pnand %p814_p10, %p38_p5  ;;  %s165_s29 = sand.u32 1, %s1014_s15  }
  0x19   : > { %s1322_s1 = sld [smem:[#allocation13_spill]]  ;;  %s169_s6 = scalar_lea.vmem [#allocation5], %s1106_s27 }
  0x1a   : > { %s176_s7 = sshll.u32 %s169_s6, 4  ;;  %s1123_s8 = scalar_lea.sflag [#allocation6], %s165_s29  ;;  %s1120_s7 = int_to_ptr.vmem [resolvable:$true] %s176_s7 }
  0x1b   : > { %p1129_p2 = pneg %p1108_p13 }
  0x1f   : > { %s1117_s5 = scalar_lea.hbm %s1322_s1, %s1102_s26  ;;  %s867_s19 = scalar_lea.hbm %s1322_s1, 512 }
  0x20   : > { %s862_s9 = scalar_lea.hbm %s1117_s5, 256  ;;  %p868_p5 = scmp.lt.s32.totalorder %s1117_s5, %s1322_s1 }
  0x21   : > { %p863_p1 = scmp.ne.s32.totalorder %s1117_s5, %s862_s9  ;;  %p869_p7 = scmp.lt.s32.totalorder %s867_s19, %s862_s9 }
  0x23   : > { %p865_p3 = pnand %p1129_p2, %p863_p1  ;;  %p870_p8 = por %p869_p7, %p868_p5 }
  0x25   : > { %p866_p4 = pneg %p865_p3 }
  0x27   : > { %p871_p10 = pnand %p870_p8, %p866_p4 }
  0x29   : > { %874 = shalt.err (!%p871_p10)
}
  0x2a   : > { %s875_s29 = scalar_lea.vmem %s1120_s7, 256  ;;  %s1016_s4 = smov [#allocation5]  }
  0x2b   : > { %p876_p9 = scmp.ne.s32.totalorder %s1120_s7, %s875_s29  ;;  %s880_s6 = sshll.u32 %s1016_s4, 4  ;;  %s881_s6 = int_to_ptr.vmem [resolvable:$false] %s880_s6 }
  0x2c   : > { %s882_s11 = scalar_lea.vmem %s881_s6, 512  ;;  %p883_p0 = scmp.lt.s32.totalorder %s1120_s7, %s881_s6 }
  0x2d   : > { %p878_p1 = pnand %p876_p9, %p1129_p2  ;;  %p884_p12 = scmp.lt.s32.totalorder %s882_s11, %s875_s29 }
  0x2f   : > { %p879_p3 = pneg %p878_p1  ;;  %p885_p11 = por %p884_p12, %p883_p0 }
  0x31   : > { %p886_p6 = pnand %p885_p11, %p879_p3 }
  0x33   : > { %889 = shalt.err (!%p886_p6)
}
  0x34   : > { %s1312_s9 = smov 128   ;;  %s1314_s17 = smov 8  }
  0x35   : > { %806 = dma.hbm_to_vmem [thread:$0]  (!%p1108_p13), %s1117_s5, 256, %s1120_s7, %s1123_s8, %s1312_s9, %s1312_s9, %s1314_s17  }
  0x36   : > { %p205_p9 = scmp.lt.s32.totalorder %s1014_s15, 3  ;;  %s1324_s0 = sld [smem:[#allocation12_spill]] }
  0x37   : > { %p1325_p6 = scmp.ge.s32.totalorder %s1014_s15, 1  ;;  %s148_s4 = scalar_lea.vmem [#allocation2], %s1106_s27 }
  0x38   : > { %s155_s6 = sshll.u32 %s148_s4, 4  ;;  %s145_s5 = scalar_lea.sflag [#allocation3], %s144_s25  ;;  %s1169_s6 = int_to_ptr.vmem [resolvable:$true] %s155_s6 }
  0x39   : > { %p1164_p11 = pnand %p1325_p6, %p205_p9 }
  0x3b   : > { %s1326_s29 = scalar_select %p1164_p11, 1, 0 }
  0x3c   : > { %s1160_s30 = scalar_lea.hbm %s1324_s0, %s1102_s26  ;;  %s895_s20 = scalar_lea.hbm %s1324_s0, 512 }
  0x3d   : > { %s890_s7 = scalar_lea.hbm %s1160_s30, 256  ;;  %p896_p5 = scmp.lt.s32.totalorder %s1160_s30, %s1324_s0 }
  0x3e   : > { %p891_p12 = scmp.ne.s32.totalorder %s1160_s30, %s890_s7  ;;  %p897_p7 = scmp.lt.s32.totalorder %s895_s20, %s890_s7 }
  0x40   : > { %p893_p0 = pnand %p891_p12, %p1129_p2  ;;  %p898_p8 = por %p897_p7, %p896_p5 }
  0x42   : > { %p894_p4 = pneg %p893_p0 }
  0x44   : > { %p899_p10 = pnand %p898_p8, %p894_p4 }
  0x46   : > { %902 = shalt.err (!%p899_p10)
}
  0x47   : > { %s903_s25 = scalar_lea.vmem %s1169_s6, 256  ;;  %s1019_s4 = smov [#allocation2]  }
  0x48   : > { %p904_p1 = scmp.ne.s32.totalorder %s1169_s6, %s903_s25  ;;  %s908_s11 = sshll.u32 %s1019_s4, 4  ;;  %s909_s11 = int_to_ptr.vmem [resolvable:$false] %s908_s11 }
  0x49   : > { %s910_s19 = scalar_lea.vmem %s909_s11, 512  ;;  %p911_p6 = scmp.lt.s32.totalorder %s1169_s6, %s909_s11 }
  0x4a   : > { %p906_p3 = pnand %p904_p1, %p1129_p2  ;;  %p912_p12 = scmp.lt.s32.totalorder %s910_s19, %s903_s25 }
  0x4c   : > { %p907_p9 = pneg %p906_p3  ;;  %p913_p0 = por %p912_p12, %p911_p6 }
  0x4e   : > { %p914_p11 = pnand %p913_p0, %p907_p9 }
  0x50   : > { %917 = shalt.err (!%p914_p11)
}
  0x51   : > { %s1327_s9 = smov 8   ;;  %s1328_s17 = smov 128  }
  0x52   : > { %803 = dma.hbm_to_vmem [thread:$0]  (!%p1108_p13), %s1160_s30, 256, %s1169_s6, %s145_s5, %s1328_s17, %s1328_s17, %s1327_s9  }
  0x53   : > { %s1200_s4 = scalar_lea.hbm %s1308_s2, %s1102_s26  ;;  %s190_s25 = scalar_lea.vmem [#allocation7], %s1106_s27 }
  0x54   : > { %s197_s11 = sshll.u32 %s190_s25, 4  ;;  %s918_s19 = scalar_lea.hbm %s1200_s4, 256  ;;  %s198_s11 = int_to_ptr.vmem [resolvable:$true] %s197_s11 }
  0x55   : > { %p919_p11 = scmp.ne.s32.totalorder %s1200_s4, %s918_s19  ;;  %s923_s30 = scalar_lea.hbm %s1308_s2, 512 }
  0x56   : > { %p924_p7 = scmp.lt.s32.totalorder %s1200_s4, %s1308_s2  ;;  %p925_p8 = scmp.lt.s32.totalorder %s923_s30, %s918_s19 }
  0x57   : > { %p921_p4 = pnand %p919_p11, %p1129_p2 }
  0x58   : > { %p926_p10 = por %p925_p8, %p924_p7 }
  0x59   : > { %p922_p5 = pneg %p921_p4 }
  0x5b   : > { %p927_p1 = pnand %p926_p10, %p922_p5 }
  0x5d   : > { %930 = shalt.err (!%p927_p1)
}
  0x5e   : > { %s931_s26 = scalar_lea.vmem %s198_s11, 256  ;;  %s1020_s27 = smov [#allocation7]  }
  0x5f   : > { %p932_p3 = scmp.ne.s32.totalorder %s198_s11, %s931_s26  ;;  %s936_s7 = sshll.u32 %s1020_s27, 4  ;;  %s937_s7 = int_to_ptr.vmem [resolvable:$false] %s936_s7 }
  0x60   : > { %s938_s20 = scalar_lea.vmem %s937_s7, 512  ;;  %p939_p12 = scmp.lt.s32.totalorder %s198_s11, %s937_s7 }
  0x61   : > { %p934_p9 = pnand %p932_p3, %p1129_p2  ;;  %p940_p0 = scmp.lt.s32.totalorder %s938_s20, %s931_s26 }
  0x63   : > { %p935_p6 = pneg %p934_p9  ;;  %p941_p11 = por %p940_p0, %p939_p12 }
  0x65   : > { %p942_p4 = pnand %p941_p11, %p935_p6 }
  0x67   : > { %945 = shalt.err (!%p942_p4)
}
  0x68   : > { %809 = dma.hbm_to_vmem [thread:$0]  (!%p1108_p13), %s1200_s4, 256, %s198_s11, %s1123_s8, %s1328_s17, %s1328_s17, %s1327_s9  }
  0x69   : > { %p1329_p2 = scmp.ne.s32.totalorder %s1326_s29, 0 }
  0x6a   : > { %s1226_s0 = sand.u32 (!%p1329_p2), 1, %s1006_s13   ;;  %p1330_p5 = scmp.ne.s32.totalorder (!%p1329_p2), %s1318_s22, 0 }
  0x6b   : > { %209 = sbr.rel (%p1329_p2) target bundleno = 687 (0x2af), region = 32  ;;  %s1229_s1 = sshll.u32 (!%p1329_p2), %s1226_s0, 4 }
  0x6c   : > { %s212_s10 = scalar_lea.sflag (!%p1329_p2), [#allocation3], %s1226_s0  ;;  %s215_s28 = scalar_lea.vmem (!%p1329_p2), [#allocation2], %s1229_s1 }
  0x70   : > { %989 = dma.done.wait (%p1330_p5), %s212_s10, 256  }
  0x71   : > { %991 = vsyncadd (%p1330_p5), %s212_s10, 4294967040  ;;  %s220_s8 = sand.u32 1, %s1067_s16   ;;  %s224_s9 = scalar_lea.vmem [#allocation5], %s1229_s1 }
  0x72   : > { %s221_s29 = scalar_lea.sflag [#allocation6], %s220_s8 }
  0x73   : > { %993 = dma.done.wait (%p1330_p5), %s221_s29, 512  }
  0x74   : > { %995 = vsyncadd (%p1330_p5), %s221_s29, 4294966784  ;;  %v1021_v0 = vmov 0.0   ;;  %vm1022_vm0 = vmmov 0   ;;  %vm276_vm1 = vcmask 261120   ;;  %v272_v1 = vld [vmem:[%s224_s9] sm:$0xff]  ;;  %v273_v2 = vld [vmem:[%s224_s9 + $0x8] sm:$0xff] }
  0x75   : > { %772 = vmatprep.subr.mxu0 %v1021_v0  ;;  %777 = vmatprep.subr.mxu1 %v1021_v0  ;;  %v270_v3 = vld [vmem:[%s215_s28] sm:$0xff]  ;;  %v271_v4 = vld [vmem:[%s215_s28 + $0x8] sm:$0xff]  ;;  %vm431_vm2 = vcmask 64512   ;;  %s233_s22 = scalar_lea.vmem [#allocation7], %s1229_s1  ;;  %s265_s17 = scalar_lea.vmem [#allocation8], %s1229_s1 }
  0x76   : > { %774 = vmatprep.mubr.msk.f32.mxu0 %vm1022_vm0, %v1021_v0  ;;  %779 = vmatprep.mubr.msk.f32.mxu1 %vm1022_vm0, %v1021_v0  ;;  %v274_v13 = vld [vmem:[%s233_s22] sm:$0xff]  ;;  %v275_v14 = vld [vmem:[%s233_s22 + $0x8] sm:$0xff]  ;;  %s616_s4 = sshll.u32 %s265_s17, 4  ;;  %s763_s25 = sshll.u32 %s1067_s16, 8  ;;  %s1257_s4 = int_to_ptr.vmem [resolvable:$true] %s616_s4 }
  0x77   : > { %773 = vmatpush3.xpose.msk.msra.mxu0 %vm276_vm1, %v272_v1  ;;  %778 = vmatpush3.xpose.msk.msra.mxu1 %vm276_vm1, %v273_v2  ;;  %s1262_s30 = scalar_lea.hbm %s1309_s3, %s763_s25  ;;  %s603_s16 = scalar_lea.sflag [#allocation4], %s1226_s0 }
  0x78   : > { %782 = vmatprep.subr.mxu0 %v1021_v0  ;;  %787 = vmatprep.subr.mxu1 %v1021_v0  ;;  %s946_s6 = scalar_lea.vmem %s1257_s4, 256  ;;  %p1331_p7 = scmp.ne.s32.totalorder %s1319_s23, 0 }
  0x79   : > { %p947_p13 = scmp.ne.s32.totalorder %s1257_s4, %s946_s6  ;;  %s1023_s5 = smov [#allocation8]  }
  0x7a   : > { %775 = vmatmul.mubr.msk.f32.vlgmr.msra.gmra.mxu0 %vm276_vm1, %v270_v3  ;;  %780 = vmatmul.mubr.msk.f32.vlgmr.msra.gmra.mxu1 %vm276_vm1, %v271_v4  ;;  %s950_s26 = sshll.u32 %s1023_s5, 4  ;;  %s951_s26 = int_to_ptr.vmem [resolvable:$false] %s950_s26 }
  0x7b   : > { %784 = vmatprep.mubr.msk.f32.mxu0 %vm1022_vm0, %v1021_v0  ;;  %789 = vmatprep.mubr.msk.f32.mxu1 %vm1022_vm0, %v1021_v0  ;;  %p948_p8 = pnand %p947_p13, %p1331_p7  ;;  %s952_s27 = scalar_lea.vmem %s951_s26, 512 }
  0x7c   : > { %783 = vmatpush3.msra.mxu0 %v274_v13  ;;  %788 = vmatpush3.msra.mxu1 %v275_v14  ;;  %p953_p1 = scmp.lt.s32.totalorder %s1257_s4, %s951_s26  ;;  %p954_p3 = scmp.lt.s32.totalorder %s952_s27, %s946_s6 }
  0x7d   : > { %p949_p10 = pneg %p948_p8 }
  0x7e   : > { %p955_p9 = por %p954_p3, %p953_p1 }
  0x80   : > { %p956_p6 = pnand %p955_p9, %p949_p10 }
 0x13a   : > { %v349_v5 = vpop.f32.mrf.mxu0  ;;  %v425_v6 = vpop.f32.mrf.mxu1 }
 0x13b   : > { %v429_v7 = vmul.f32 0.17677669, %v349_v5  ;;  %v430_v8 = vmul.f32 0.17677669, %v425_v6 }
 0x13c   : > { %v776_v9 = vpop.f32.mrf.mxu0  ;;  %v781_v10 = vpop.f32.mrf.mxu1 }
 0x13d   : > { %v432_v11 = vsel %vm431_vm2, %v429_v7, -inf  ;;  %v435_v12 = vsel %vm431_vm2, %v430_v8, -inf }
 0x13e   : > { %433 = vmax.xlane.f32.xlu0 %v432_v11 }
 0x142   : > { %436 = vmax.xlane.f32.xlu0 %v435_v12 }
 0x1c7   : > { %v434_v15 = vpop.xlane.xlu0 %433 }
 0x1c8   : > { %v438_v16 = vsub.f32 %v429_v7, %v434_v15 }
 0x1ca   : > { %v440_v17 = vmul.f32 1.442695, %v438_v16 }
 0x1cb   : > { %v437_v18 = vpop.xlane.xlu0 %436 }
 0x1cc   : > { %854 = vpow2.f32 %v440_v17  ;;  %v439_v19 = vsub.f32 %v430_v8, %v437_v18 }
 0x1ce   : > { %v442_v20 = vmul.f32 1.442695, %v439_v19 }
 0x1d0   : > { %856 = vpow2.f32 %v442_v20 }
 0x1d9   : > { %v855_v21 = vpop.eup %854 }
 0x1da   : > { %785 = vmatmul.mubr.msk.f32.vlgmr.msra.gmra.mxu0 %vm431_vm2, %v855_v21  ;;  %v444_v22 = vsel %vm431_vm2, %v855_v21, 0.0 }
 0x1db   : > { %445 = vadd.xlane.f32.xlu1 %v444_v22 }
 0x1dd   : > { %v857_v23 = vpop.eup %856 }
 0x1de   : > { %790 = vmatmul.mubr.msk.f32.vlgmr.msra.gmra.mxu1 %vm431_vm2, %v857_v23  ;;  %v447_v24 = vsel %vm431_vm2, %v857_v23, 0.0 }
 0x1df   : > { %448 = vadd.xlane.f32.xlu1 %v447_v24 }
 0x264   : > { %v446_v25 = vpop.xlane.xlu1 %445 }
 0x265   : > { %858 = vrcp.f32 %v446_v25 }
 0x268   : > { %v449_v26 = vpop.xlane.xlu1 %448 }
 0x269   : > { %860 = vrcp.f32 %v449_v26 }
 0x272   : > { %v859_v27 = vpop.eup %858 }
 0x276   : > { %v861_v31 = vpop.eup %860 }
 0x29a   : > { %v519_v28 = vpop.f32.mrf.mxu0 }
 0x29b   : > { %v598_v29 = vmul.f32 %v859_v27, %v519_v28 }
 0x29c   : > { %v786_v30 = vpop.f32.mrf.mxu0 }
 0x29d   : > { %600 = vst.msk [vmem:[%s265_s17] sm:$0xff] %vm276_vm1, %v598_v29 }
 0x29e   : > { %v592_v32 = vpop.f32.mrf.mxu1 }
 0x29f   : > { %v599_v33 = vmul.f32 %v861_v31, %v592_v32 }
 0x2a0   : > { %v791_v34 = vpop.f32.mrf.mxu1 }
 0x2a1   : > { %601 = vst.msk [vmem:[%s265_s17 + $0x8] sm:$0xff] %vm276_vm1, %v599_v33 }
 0x2a2   : > { %959 = shalt.err (!%p956_p6)
}
 0x2a3   : > { %s960_s7 = scalar_lea.hbm %s1262_s30, 256  ;;  %s964_s10 = scalar_lea.hbm %s1309_s3, 512 }
 0x2a4   : > { %p961_p12 = scmp.ne.s32.totalorder %s1262_s30, %s960_s7  ;;  %p965_p4 = scmp.lt.s32.totalorder %s1262_s30, %s1309_s3 }
 0x2a5   : > { %p966_p2 = scmp.lt.s32.totalorder %s964_s10, %s960_s7 }
 0x2a6   : > { %p962_p0 = pnand %p961_p12, %p1331_p7 }
 0x2a7   : > { %p967_p5 = por %p966_p2, %p965_p4 }
 0x2a8   : > { %p963_p11 = pneg %p962_p0 }
 0x2aa   : > { %p968_p13 = pnand %p967_p5, %p963_p11 }
 0x2ac   : > { %971 = shalt.err (!%p968_p13)
}
 0x2ad   : > { %s1024_s29 = smov 128   ;;  %s1025_s9 = smov 8  }
 0x2ae   : > { %798 = dma.vmem_to_hbm [thread:$0]  (%p1331_p7), %s1257_s4, 256, %s1262_s30, %s603_s16, %s1024_s29, %s1024_s29, %s1025_s9  }
 0x2af PF: > { %s631_s22 = sand.u32 1, %s1002_s12   ;;  %p1332_p8 = scmp.ne.s32.totalorder %s1320_s24, 0 }
 0x2b0   : > { %p1333_p10 = scmp.ge.s32.totalorder %s1014_s15, 2  ;;  %s632_s17 = scalar_lea.sflag [#allocation4], %s631_s22 }
 0x2b2   : > { %p811_p1 = pnand %p1333_p10, %p1332_p8 }
 0x2b4   : > { %p812_p3 = pneg %p811_p1 }
 0x2b6   : > { %997 = dma.done.wait (%p812_p3), %s632_s17, 256  }
 0x2b7   : > { %999 = vsyncadd (%p812_p3), %s632_s17, 4294967040  ;;  %p19_p9 = scmp.ge.s32.totalorder %s1071_s18, 4   ;;  %s1334_s12 = smov %s1006_s13 }
 0x2b8   : > { %s1335_s13 = smov %s1010_s14  ;;  %s1336_s14 = smov %s1083_s21 }
 0x2b9   : > { %s1337_s15 = smov %s1071_s18  ;;  %21 = sbr.rel (!%p19_p9) target bundleno = 10 (0xa), region = 101 }
 0x2be   :  { %637 = vsyncpa [#allocation3], 1 }
 0x2bf   :  { %639 = vsyncpa [#allocation3 + $0x1], 1 }
 0x2c0   :  { %640 = vsyncpa [#allocation6], 1 }
 0x2c1   :  { %642 = vsyncpa [#allocation6 + $0x1], 1 }
 0x2c2   :  { %643 = vsyncpa [#allocation4], 1 }
 0x2c3   :  { %645 = vsyncpa [#allocation4 + $0x1], 1 }

</bundles_post_ra>
